<compile_context>
chip_gen: v7x
topology: tpu7x:2x2x1
jax: 0.10.0
libtpu: 0.0.40
codegen_flags: <defaults>
</compile_context>

<pallas_src>
import functools

import jax
import jax.numpy as jnp
from jax.experimental import pallas as pl
from jax.experimental.pallas import tpu as pltpu


def _round_up(x, m):
    return (x + m - 1) // m * m


def _round_down(x, m):
    return x // m * m


def _mlp_kernel(seed_ref, x_ref, w_ref, b_ref, o_ref, acc_ref, *,
                p, training, k_total, ragged_k, use_hw_prng):
    # seed_ref: SMEM (1,) int32            (scalar prefetch)
    # x_ref:    (tile_m, tile_k)  native x dtype
    # w_ref:    (tile_k, C_pad)   bf16   (pre-transposed, 1/(1-p)-scaled weight)
    # b_ref:    (1, C_pad)        f32
    # o_ref:    (tile_m, C_pad)   f32
    # acc_ref:  (tile_m, C_pad)   f32 VMEM scratch (resident across the K axis)
    i = pl.program_id(0)
    k = pl.program_id(1)
    nk = pl.num_programs(1)

    @pl.when(k == 0)
    def _init():
        acc_ref[...] = jnp.zeros_like(acc_ref)

    x = x_ref[...]
    tm, tk = x.shape

    # Ragged-K tail: zero columns past K so garbage (possibly Inf/NaN) never
    # reaches the MXU.  Only compiled in when K % tile_k != 0 (static flag).
    if ragged_k:
        col = k * tk + jax.lax.broadcasted_iota(jnp.int32, (tm, tk), 1)
        x = jnp.where(col < k_total, x, jnp.zeros_like(x))

    # Inverted dropout: keep-mask only (integer threshold compare); the 1/(1-p)
    # rescale is already folded into the weight.
    if training and p > 0.0:
        thr = jnp.uint32(min(int(round(p * 2.0 ** 32)), 2 ** 32 - 1))
        if use_hw_prng:
            # Hardware PRNG path (real TPU): ~2 VPU ops/element on the big tile.
            pltpu.prng_seed(seed_ref[0]
                            + i * jnp.int32(1000003)
                            + k * jnp.int32(7919))
            raw = pltpu.prng_random_bits((tm, tk))
            bits = raw if raw.dtype == jnp.uint32 else pltpu.bitcast(raw, jnp.uint32)
        else:
            # Portable counter-based hash (CPU / interpret-mode fallback).
            rg = (i * tm + jax.lax.broadcasted_iota(jnp.int32, (tm, tk), 0)
                  ).astype(jnp.uint32)
            cg = (k * tk + jax.lax.broadcasted_iota(jnp.int32, (tm, tk), 1)
                  ).astype(jnp.uint32)
            h = (rg * jnp.uint32(0x9E3779B1)
                 + cg * jnp.uint32(0x85EBCA77)
                 + seed_ref[0].astype(jnp.uint32) * jnp.uint32(0x27D4EB2F)
                 + jnp.uint32(0x165667B1))
            h = h ^ (h >> 16)
            h = h * jnp.uint32(0x7FEB352D)
            h = h ^ (h >> 15)
            h = h * jnp.uint32(0x846CA68B)
            h = h ^ (h >> 16)
            bits = h
        x = jnp.where(bits >= thr, x, jnp.zeros_like(x))

    # bf16 MXU operands, f32 accumulation.
    acc_ref[...] += jnp.dot(x.astype(jnp.bfloat16), w_ref[...],
                            preferred_element_type=jnp.float32)

    @pl.when(k == nk - 1)
    def _finalize():
        o_ref[...] = acc_ref[...] + b_ref[...]


def mlp_classifier_pallas(x, weight, bias, *, p=0.1, training=True, seed=0,
                          tile_m=None, tile_k=None, use_hw_prng=None,
                          vmem_budget_bytes=None):
    """Forward pass of MLPClassifier.

    x:      (N, ...)              -- flattened from dim 1 (torch.flatten(x, 1)),
                                     consumed in its native dtype (f32 or bf16)
    weight: (n_classes, n_input)  -- nn.Linear weight, PyTorch layout
    bias:   (n_classes,)
    """
    N = x.shape[0]
    x2 = x.reshape(N, -1)                 # flatten(., 1): pure reshape, no copy/cast
    K = x2.shape[1]
    C, K_w = weight.shape
    assert K_w == K, (weight.shape, K)
    C_pad = _round_up(C, 128)
    x_bytes = x2.dtype.itemsize

    if use_hw_prng is None:
        # Hardware PRNG only lowers through Mosaic on a real TPU backend.
        use_hw_prng = jax.default_backend() == "tpu"

    # ---- chip-aware VMEM budget (v5e/v6e: 128 MiB, v7x: 64 MiB per core) ----
    cap = 128 * 1024 * 1024
    if jax.default_backend() == "tpu":
        try:
            cap = int(pltpu.get_tpu_info().vmem_capacity_bytes)
        except Exception:
            cap = 64 * 1024 * 1024        # conservative (v7x per-core VMEM)
    budget = int(vmem_budget_bytes) if vmem_budget_bytes is not None else int(cap * 0.70)
    vmem_limit = max(32 << 20, int(min(cap - (4 << 20), budget + (16 << 20))))

    def _footprint(tm, tk):
        return (2 * tk * C_pad * 2        # double-buffered bf16 weight block
                + 2 * tm * tk * x_bytes   # double-buffered activation block
                + 2 * tm * C_pad * 4      # double-buffered f32 output block
                + tm * C_pad * 4          # f32 accumulator scratch
                + 2 * C_pad * 4)          # bias

    # ---- K tiling: keep the weight resident when it fits, K-tile otherwise ----
    if tile_k is None:
        tile_k = K
        if K > 128 and _footprint(8, K) > budget:
            per_k = 4 * C_pad + 2 * 8 * x_bytes
            const = 2 * 8 * C_pad * 4 + 8 * C_pad * 4 + 2 * C_pad * 4
            tile_k = max(128, _round_down(max(budget - const, per_k * 128) // per_k, 128))
            tile_k = min(tile_k, max(128, _round_down(K, 128)))
    tile_k = max(1, min(int(tile_k), K))
    grid_k = pl.cdiv(K, tile_k)
    if grid_k == 1:
        tile_k = K
    ragged_k = (K % tile_k) != 0

    # ---- M tiling: as big as the VMEM budget allows, >=2 steps for v7x ----
    if tile_m is None:
        if N <= 8:
            tile_m = N                    # block == full dim (always legal)
        else:
            max_tm = min(1024, _round_up(N, 8))
            if N >= 16:
                # keep >=2 grid steps so both v7x TensorCores get work
                max_tm = min(max_tm, max(8, _round_up(pl.cdiv(N, 2), 8)))
            avail = budget - (2 * tile_k * C_pad * 2 + 2 * C_pad * 4)
            per_row = 2 * tile_k * x_bytes + 3 * C_pad * 4
            tm = avail // per_row if avail > 0 else 8
            tile_m = int(max(8, min(max_tm, _round_down(tm, 8))))
    tile_m = max(1, min(int(tile_m), _round_up(N, 8) if N >= 8 else N))
    grid_m = pl.cdiv(N, tile_m)

    # ---- one-time (tiny) weight/bias layout prep ----
    # 1/(1-p) rescale folded into the weight; (C,K) -> (K_pad_w, C_pad) bf16.
    # TODO(synk): hoist this prep out of the per-call wrapper when the weight is
    # static across calls.
    scale = 1.0 / (1.0 - float(p)) if (training and p > 0.0) else 1.0
    K_pad_w = grid_k * tile_k
    w_t = (weight.astype(jnp.float32) * jnp.float32(scale)).astype(jnp.bfloat16).T
    if K_pad_w != K or C_pad != C:
        w_t = jnp.pad(w_t, ((0, K_pad_w - K), (0, C_pad - C)))
    b2 = bias.astype(jnp.float32).reshape(1, C)
    if C_pad != C:
        b2 = jnp.pad(b2, ((0, 0), (0, C_pad - C)))

    seed_arr = jnp.asarray([seed], dtype=jnp.int32)
    kernel = functools.partial(
        _mlp_kernel, p=float(p), training=bool(training), k_total=int(K),
        ragged_k=bool(ragged_k), use_hw_prng=bool(use_hw_prng))

    out = pl.pallas_call(
        kernel,
        out_shape=jax.ShapeDtypeStruct((N, C_pad), jnp.float32),
        grid_spec=pltpu.PrefetchScalarGridSpec(
            num_scalar_prefetch=1,
            grid=(grid_m, grid_k),
            in_specs=[
                pl.BlockSpec((tile_m, tile_k), lambda i, k, seed: (i, k)),
                pl.BlockSpec((tile_k, C_pad), lambda i, k, seed: (k, 0)),
                pl.BlockSpec((1, C_pad), lambda i, k, seed: (0, 0)),
            ],
            out_specs=pl.BlockSpec((tile_m, C_pad), lambda i, k, seed: (i, 0)),
            scratch_shapes=[pltpu.VMEM((tile_m, C_pad), jnp.float32)],
        ),
        compiler_params=pltpu.CompilerParams(
            dimension_semantics=("parallel", "arbitrary"),
            vmem_limit_bytes=int(vmem_limit),
        ),
    )(seed_arr, x2, w_t, b2)

    return out[:, :C]


def mlp_classifier_ref(x, weight, bias, *, bf16_matmul=True):
    """Pure-JAX reference (eval mode: dropout == identity)."""
    N = x.shape[0]
    x2 = x.reshape(N, -1).astype(jnp.float32)
    if bf16_matmul:
        y = jnp.dot(x2.astype(jnp.bfloat16), weight.astype(jnp.bfloat16).T,
                    preferred_element_type=jnp.float32)
    else:
        y = x2 @ weight.astype(jnp.float32).T
    return y + bias.astype(jnp.float32)[None, :]


if __name__ == "__main__":
    # Shapes consistent with the module: x (2,4,16,16) -> n_input = 1024,
    # n_classes = 10, dropout p = 0.1.
    N, C_IN, HS, WS = 2, 4, 16, 16
    N_INPUT = C_IN * HS * WS
    N_CLASSES = 10
    P = 0.1

    key = jax.random.PRNGKey(0)
    kx, kw, kb = jax.random.split(key, 3)
    x = jax.random.normal(kx, (N, C_IN, HS, WS), dtype=jnp.float32)
    weight = jax.random.normal(kw, (N_CLASSES, N_INPUT), dtype=jnp.float32) / jnp.sqrt(N_INPUT)
    bias = jax.random.normal(kb, (N_CLASSES,), dtype=jnp.float32) * 0.01

    # --- eval mode (dropout = identity): check against pure-JAX references ---
    out_eval = jax.block_until_ready(
        mlp_classifier_pallas(x, weight, bias, p=P, training=False))
    assert out_eval.shape == (N, N_CLASSES), out_eval.shape
    ref_bf16 = mlp_classifier_ref(x, weight, bias, bf16_matmul=True)
    assert jnp.allclose(out_eval, ref_bf16, atol=2e-2, rtol=2e-2), \
        float(jnp.max(jnp.abs(out_eval - ref_bf16)))
    ref_f32 = mlp_classifier_ref(x, weight, bias, bf16_matmul=False)
    assert jnp.allclose(out_eval, ref_f32, atol=5e-2, rtol=5e-2), \
        float(jnp.max(jnp.abs(out_eval - ref_f32)))

    # --- bf16 activations taken in their native dtype (halved activation DMA) ---
    out_bf16 = jax.block_until_ready(
        mlp_classifier_pallas(x.astype(jnp.bfloat16), weight, bias, p=P, training=False))
    assert jnp.allclose(out_bf16, ref_f32, atol=8e-2, rtol=8e-2), \
        float(jnp.max(jnp.abs(out_bf16 - ref_f32)))

    # --- training mode: in-kernel dropout; shape / finiteness ---
    out_train = jax.block_until_ready(
        mlp_classifier_pallas(x, weight, bias, p=P, training=True, seed=0))
    assert out_train.shape == (N, N_CLASSES)
    assert bool(jnp.all(jnp.isfinite(out_train)))

    # --- dropout semantics: identity Linear => logits are exactly {0, ~1/(1-p)} ---
    n = 256
    x_id = jnp.ones((8, n), dtype=jnp.float32)
    w_id = jnp.eye(n, dtype=jnp.float32)
    b_id = jnp.zeros((n,), dtype=jnp.float32)
    out_id = jax.block_until_ready(
        mlp_classifier_pallas(x_id, w_id, b_id, p=P, training=True, seed=123))
    scale = 1.0 / (1.0 - P)
    near_zero = jnp.abs(out_id) < 0.02
    near_scale = jnp.abs(out_id - scale) < 0.02
    assert bool(jnp.all(near_zero | near_scale))
    keep_frac = float(jnp.mean(near_scale))
    assert 0.82 <= keep_frac <= 0.97, keep_frac   # E[keep] = 0.9 over 2048 draws

    # --- ragged-edge / K-tiled path: N=20, K=200, C=7, forced tile_m=8, tile_k=128
    #     -> grid=(3,2), ragged M and K edges, accumulator across K ---
    kx2, kw2, kb2 = jax.random.split(jax.random.PRNGKey(1), 3)
    xs = jax.random.normal(kx2, (20, 200), dtype=jnp.float32)
    ws = jax.random.normal(kw2, (7, 200), dtype=jnp.float32) / jnp.sqrt(200.0)
    bs = jax.random.normal(kb2, (7,), dtype=jnp.float32) * 0.01
    out_s = jax.block_until_ready(
        mlp_classifier_pallas(xs, ws, bs, p=P, training=False, tile_m=8, tile_k=128))
    assert out_s.shape == (20, 7), out_s.shape
    ref_s = mlp_classifier_ref(xs, ws, bs, bf16_matmul=False)
    assert jnp.allclose(out_s, ref_s, atol=5e-2, rtol=5e-2), \
        float(jnp.max(jnp.abs(out_s - ref_s)))

    print("KERNEL_OK")
</pallas_src>

<mosaic_0001>
module attributes {stable_mosaic.version = 11 : i64} {
  func.func @_mlp_kernel(%arg0: i32, %arg1: i32, %arg2: memref<1xi32, #tpu.memory_space<smem>>, %arg3: memref<2x1024xf32, #tpu.memory_space<vmem>>, %arg4: memref<1024x128xbf16, #tpu.memory_space<vmem>>, %arg5: memref<1x128xf32, #tpu.memory_space<vmem>>, %arg6: memref<2x128xf32, #tpu.memory_space<vmem>>, %arg7: memref<2x128xf32, #tpu.memory_space<vmem>>) attributes {dimension_semantics = [#tpu.dimension_semantics<parallel>, #tpu.dimension_semantics<arbitrary>], iteration_bounds = array<i64: 1, 1>, scalar_prefetch = 1 : i64, scratch_operands = 1 : i64, tpu.core_type = #tpu.core_type<tc>, window_params = [{transform_indices = @transform_0, window_bounds = array<i64: 2, 1024>}, {transform_indices = @transform_1, window_bounds = array<i64: 1024, 128>}, {pipeline_mode = #tpu.pipeline_mode<synchronous>, transform_indices = @transform_2, window_bounds = array<i64: 1, 128>}, {transform_indices = @transform_3, window_bounds = array<i64: 2, 128>}]} {
    %c0_i32 = arith.constant 0 : i32
    %0 = arith.cmpi eq, %arg1, %c0_i32 : i32
    %1 = arith.extui %0 : i1 to i32
    %c0_i32_0 = arith.constant 0 : i32
    %2 = arith.cmpi ne, %1, %c0_i32_0 : i32
    scf.if %2 {
      %cst_10 = arith.constant 0.000000e+00 : f32
      %13 = vector.broadcast %cst_10 : f32 to vector<2x128xf32>
      %c0_11 = arith.constant 0 : index
      %c0_12 = arith.constant 0 : index
      %14 = vector.load %arg7[%c0_11, %c0_12] : memref<2x128xf32, #tpu.memory_space<vmem>>, vector<2x128xf32>
      tpu.vector_store %arg7[%c0_11, %c0_12], %13 {strides = array<i32>} : memref<2x128xf32, #tpu.memory_space<vmem>>, vector<2x128xf32>,
    } else {
    }
    %c0 = arith.constant 0 : index
    %c0_1 = arith.constant 0 : index
    %3 = vector.load %arg3[%c0, %c0_1] : memref<2x1024xf32, #tpu.memory_space<vmem>>, vector<2x1024xf32>
    %c0_2 = arith.constant 0 : index
    %c0_3 = arith.constant 0 : index
    %4 = vector.load %arg7[%c0_2, %c0_3] : memref<2x128xf32, #tpu.memory_space<vmem>>, vector<2x128xf32>
    %5 = arith.truncf %3 : vector<2x1024xf32> to vector<2x1024xbf16>
    %c0_4 = arith.constant 0 : index
    %c0_5 = arith.constant 0 : index
    %6 = vector.load %arg4[%c0_4, %c0_5] : memref<1024x128xbf16, #tpu.memory_space<vmem>>, vector<1024x128xbf16>
    %cst = arith.constant dense<0.000000e+00> : vector<2x128xf32>
    %7 = tpu.matmul %5, %6, %cst {dimension_numbers = #tpu.dot_dimension_numbers<[1], [0], [0], [1], [0, 0, 1, 1], [], []>} : vector<2x1024xbf16>, vector<1024x128xbf16>, vector<2x128xf32> -> vector<2x128xf32>
    %8 = arith.addf %4, %7 : vector<2x128xf32>
    %c0_6 = arith.constant 0 : index
    %c0_7 = arith.constant 0 : index
    %9 = vector.load %arg7[%c0_6, %c0_7] : memref<2x128xf32, #tpu.memory_space<vmem>>, vector<2x128xf32>
    tpu.vector_store %arg7[%c0_6, %c0_7], %8 {strides = array<i32>} : memref<2x128xf32, #tpu.memory_space<vmem>>, vector<2x128xf32>,
    %c0_i32_8 = arith.constant 0 : i32
    %10 = arith.cmpi eq, %arg1, %c0_i32_8 : i32
    %11 = arith.extui %10 : i1 to i32
    %c0_i32_9 = arith.constant 0 : i32
    %12 = arith.cmpi ne, %11, %c0_i32_9 : i32
    scf.if %12 {
      %c0_10 = arith.constant 0 : index
      %c0_11 = arith.constant 0 : index
      %13 = vector.load %arg7[%c0_10, %c0_11] : memref<2x128xf32, #tpu.memory_space<vmem>>, vector<2x128xf32>
      %c0_12 = arith.constant 0 : index
      %c0_13 = arith.constant 0 : index
      %14 = vector.load %arg5[%c0_12, %c0_13] : memref<1x128xf32, #tpu.memory_space<vmem>>, vector<1x128xf32>
      %15 = vector.broadcast %14 : vector<1x128xf32> to vector<2x128xf32>
      %16 = arith.addf %13, %15 : vector<2x128xf32>
      %c0_14 = arith.constant 0 : index
      %c0_15 = arith.constant 0 : index
      %17 = vector.load %arg6[%c0_14, %c0_15] : memref<2x128xf32, #tpu.memory_space<vmem>>, vector<2x128xf32>
      tpu.vector_store %arg6[%c0_14, %c0_15], %16 {strides = array<i32>} : memref<2x128xf32, #tpu.memory_space<vmem>>, vector<2x128xf32>,
    } else {
    }
    return
  }
  func.func @transform_0(%arg0: i32, %arg1: i32, %arg2: memref<1xi32, #tpu.memory_space<smem>>) -> (i32, i32) {
    %c0_i32 = arith.constant 0 : i32
    return %arg0, %arg1 : i32, i32
  }
  func.func @transform_1(%arg0: i32, %arg1: i32, %arg2: memref<1xi32, #tpu.memory_space<smem>>) -> (i32, i32) {
    %c0_i32 = arith.constant 0 : i32
    %c0_i32_0 = arith.constant 0 : i32
    return %arg1, %c0_i32 : i32, i32
  }
  func.func @transform_2(%arg0: i32, %arg1: i32, %arg2: memref<1xi32, #tpu.memory_space<smem>>) -> (i32, i32) {
    %c0_i32 = arith.constant 0 : i32
    %c0_i32_0 = arith.constant 0 : i32
    %c0_i32_1 = arith.constant 0 : i32
    return %c0_i32, %c0_i32_0 : i32, i32
  }
  func.func @transform_3(%arg0: i32, %arg1: i32, %arg2: memref<1xi32, #tpu.memory_space<smem>>) -> (i32, i32) {
    %c0_i32 = arith.constant 0 : i32
    %c0_i32_0 = arith.constant 0 : i32
    return %arg0, %c0_i32 : i32, i32
  }
}

</mosaic_0001>

<bundles_post_ra>
// kernel: tpu_custom_call.1
= control target key start
LH: loop header
LB: loop body
LE: loop exit
PB: predicated region body
PF: predicated region fallthrough
CT: control target
= control target key end

     0   :  { %10 = vsyncpa [#allocation6], 0  ;;  %s1226_s0 = inlined_call_operand.<no memory space> [shape: s32[1], index: 0, kind: input, shape index: {}]   ;;  %s1227_s1 = inlined_call_operand.hbm [shape: f32[2,1024], index: 1, kind: input, shape index: {}]   ;;  %s1228_s2 = inlined_call_operand.hbm [shape: bf16[1024,128], index: 2, kind: input, shape index: {}]   ;;  %s1229_s3 = inlined_call_operand.hbm [shape: f32[1,128], index: 3, kind: input, shape index: {}]   ;;  %s1230_s4 = inlined_call_operand.hbm [shape: f32[2,128], index: 4, kind: output, shape index: {}]  }
   0x1   :  { %11 = vsyncpa [#allocation9], 0 }
   0x2   :  { %12 = vsyncpa [#allocation7], 0  ;;  %s1139_s15 = smov [#allocation8]   ;;  %s1045_s18 = scalar_lea.hbm %s1228_s2, 8192 }
   0x3   :  { %s28_s16 = sshll.u32 %s1139_s15, 4  ;;  %p1046_p0 = scmp.ne.s32.totalorder %s1228_s2, %s1045_s18  ;;  %s29_s16 = int_to_ptr.vmem [resolvable:$true] %s28_s16 }
   0x4   :  { %p1049_p1 = scmp.lt.u32.totalorder %s1045_s18, %s1228_s2 }
   0x6   :  { %p1051_p2 = pnand %p1049_p1, %p1046_p0 }
   0x8   :  { %1054 = shalt.err (!%p1051_p2)
}
   0x9   :  { %s1055_s23 = scalar_lea.vmem %s29_s16, 8192  ;;  %p1060_p4 = scmp.lt.s32.totalorder %s29_s16, %s29_s16 }
   0xa   :  { %p1056_p3 = scmp.ne.s32.totalorder %s29_s16, %s1055_s23  ;;  %p1061_p5 = scmp.lt.s32.totalorder %s1055_s23, %s1055_s23 }
   0xc   :  { %p1062_p6 = por %p1061_p5, %p1060_p4 }
   0xe   :  { %p1063_p7 = pnand %p1062_p6, %p1056_p3 }
  0x10   :  { %1066 = shalt.err (!%p1063_p7)
}
  0x11   :  { %s1140_s24 = smov 64   ;;  %s1141_s25 = smov 4  }
  0x12   :  { %34 = dma.hbm_to_vmem [thread:$0]  %s1228_s2, 8192, %s29_s16, [#allocation9], %s1140_s24, %s1140_s24, %s1141_s25  }
  0x13   :  { %s1142_s28 = smov [#allocation5]   ;;  %s1143_s30 = smov [#allocation10]  }
  0x14   :  { %s19_s29 = sshll.u32 %s1142_s28, 4  ;;  %s41_s5 = sshll.u32 %s1143_s30, 4  ;;  %s20_s29 = int_to_ptr.vmem [resolvable:$true] %s19_s29  ;;  %s42_s5 = int_to_ptr.vmem [resolvable:$true] %s41_s5 }
  0x15   :  { %s1067_s8 = scalar_lea.hbm %s1227_s1, 256 }
  0x16   :  { %p1068_p8 = scmp.ne.s32.totalorder %s1227_s1, %s1067_s8  ;;  %p1071_p9 = scmp.lt.u32.totalorder %s1067_s8, %s1227_s1 }
  0x18   :  { %p1073_p10 = pnand %p1071_p9, %p1068_p8 }
  0x1a   :  { %1076 = shalt.err (!%p1073_p10)
}
  0x1b   :  { %s1077_s2 = scalar_lea.vmem %s20_s29, 256  ;;  %p1082_p12 = scmp.lt.s32.totalorder %s20_s29, %s20_s29 }
  0x1c   :  { %p1078_p11 = scmp.ne.s32.totalorder %s20_s29, %s1077_s2  ;;  %p1083_p13 = scmp.lt.s32.totalorder %s1077_s2, %s1077_s2 }
  0x1e   :  { %p1084_p0 = por %p1083_p13, %p1082_p12 }
  0x20   :  { %p1085_p1 = pnand %p1084_p0, %p1078_p11 }
  0x22   :  { %1088 = shalt.err (!%p1085_p1)
}
  0x23   :  { %22 = dma.hbm_to_vmem [thread:$0]  %s1227_s1, 256, %s20_s29, [#allocation6]  }
  0x24   :  { %s1089_s17 = scalar_lea.hbm %s1229_s3, 16 }
  0x25   :  { %p1090_p2 = scmp.ne.s32.totalorder %s1229_s3, %s1089_s17  ;;  %p1093_p3 = scmp.lt.u32.totalorder %s1089_s17, %s1229_s3 }
  0x27   :  { %p1095_p4 = pnand %p1093_p3, %p1090_p2 }
  0x29   :  { %1098 = shalt.err (!%p1095_p4)
}
  0x2a   :  { %s1099_s21 = scalar_lea.vmem %s42_s5, 16  ;;  %s1103_s22 = scalar_lea.vmem %s42_s5, 32 }
  0x2b   :  { %p1100_p5 = scmp.ne.s32.totalorder %s42_s5, %s1099_s21  ;;  %p1104_p6 = scmp.lt.s32.totalorder %s42_s5, %s42_s5 }
  0x2c   :  { %p1105_p7 = scmp.lt.s32.totalorder %s1103_s22, %s1099_s21 }
  0x2e   :  { %p1106_p8 = por %p1105_p7, %p1104_p6 }
  0x30   :  { %p1107_p9 = pnand %p1106_p8, %p1100_p5 }
  0x32   :  { %1110 = shalt.err (!%p1107_p9)
}
  0x33   :  { %44 = dma.hbm_to_vmem [thread:$0]  %s1229_s3, 16, %s42_s5, [#allocation9]  }
  0x34   :  { %1133 = dma.done.wait [#allocation6], 256  }
  0x35   :  { %1134 = vsyncadd [#allocation6], 4294967040 }
  0x36   :  { %1135 = dma.done.wait [#allocation9], 8208  }
  0x37   :  { %1136 = vsyncadd [#allocation9], 4294959088  ;;  %v979_v0 = vld [vmem:[#allocation8 + $0x40] sm:$0xff]   ;;  %v983_v4 = vld [vmem:[#allocation8 + $0x48] sm:$0xff]   ;;  %v1144_v22 = vmov 1983009808   ;;  %v69_v24 = vlaneseq }
  0x38   :  { %v980_v1 = vld [vmem:[#allocation8 + $0xc0] sm:$0xff]   ;;  %883 = vmatprep.subr.bf16.mxu0 %v979_v0  ;;  %v984_v5 = vld [vmem:[#allocation8 + $0xc8] sm:$0xff]   ;;  %v987_v8 = vld [vmem:[#allocation8 + $0x50] sm:$0xff]   ;;  %v67_v23 = vunpack.c.l.s4 %v1144_v22  ;;  %s1146_s3 = smov [#allocation11]  }
  0x39   :  { %v981_v2 = vld [vmem:[#allocation8] sm:$0xff]   ;;  %905 = vmatprep.subr.bf16.mxu1 %v980_v1  ;;  %v985_v6 = vld [vmem:[#allocation8 + $0x8] sm:$0xff]   ;;  %v988_v9 = vld [vmem:[#allocation8 + $0xd0] sm:$0xff]   ;;  %v70_v30 = vshrl.u32 %v69_v24, 7  ;;  %s808_s24 = sshll.u32 %s1146_s3, 4  ;;  %s809_s24 = int_to_ptr.vmem [resolvable:$true] %s808_s24 }
  0x3a   :  { %v982_v3 = vld [vmem:[#allocation8 + $0x80] sm:$0xff]   ;;  %884 = vmatpush3.bf16.msra.mxu0 %v981_v2  ;;  %v986_v7 = vld [vmem:[#allocation8 + $0x88] sm:$0xff]   ;;  %v989_v10 = vld [vmem:[#allocation8 + $0x10] sm:$0xff]   ;;  %v68_v29 = vunpack.c.0.s8 %v67_v23  ;;  %s1111_s25 = scalar_lea.vmem %s809_s24, 32  ;;  %p1116_p11 = scmp.lt.s32.totalorder %s809_s24, %s809_s24 }
  0x3b   :  { %906 = vmatpush3.bf16.msra.mxu1 %v982_v3  ;;  %885 = vmatprep.subr.bf16.mxu0 %v983_v4  ;;  %v990_v11 = vld [vmem:[#allocation8 + $0x90] sm:$0xff]   ;;  %v991_v12 = vld [vmem:[#allocation8 + $0x58] sm:$0xff]   ;;  %v995_v16 = vld [vmem:[#allocation8 + $0x60] sm:$0xff]   ;;  %p1112_p10 = scmp.ne.s32.totalorder %s809_s24, %s1111_s25  ;;  %p1117_p12 = scmp.lt.s32.totalorder %s1111_s25, %s1111_s25 }
  0x3c   :  { %907 = vmatprep.subr.bf16.mxu1 %v984_v5  ;;  %v992_v13 = vld [vmem:[#allocation8 + $0xd8] sm:$0xff]   ;;  %v996_v17 = vld [vmem:[#allocation8 + $0xe0] sm:$0xff]   ;;  %v999_v20 = vld [vmem:[#allocation8 + $0x68] sm:$0xff]   ;;  %v1208_v35 = vsub.s32 %v68_v29, %v70_v30 }
  0x3d   :  { %v993_v14 = vld [vmem:[#allocation8 + $0x18] sm:$0xff]   ;;  %v997_v18 = vld [vmem:[#allocation8 + $0x20] sm:$0xff]   ;;  %v1000_v21 = vld [vmem:[#allocation8 + $0xe8] sm:$0xff]   ;;  %p1118_p13 = por %p1117_p12, %p1116_p11 }
  0x3e   :  { %886 = vmatpush3.bf16.msra.mxu0 %v985_v6  ;;  %v994_v15 = vld [vmem:[#allocation8 + $0x98] sm:$0xff]   ;;  %v998_v19 = vld [vmem:[#allocation8 + $0xa0] sm:$0xff]   ;;  %v1001_v25 = vld [vmem:[#allocation8 + $0x28] sm:$0xff]  }
  0x3f   :  { %908 = vmatpush3.bf16.msra.mxu1 %v986_v7  ;;  %887 = vmatprep.subr.bf16.mxu0 %v987_v8  ;;  %v1002_v26 = vld [vmem:[#allocation8 + $0xa8] sm:$0xff]   ;;  %v1003_v27 = vld [vmem:[#allocation8 + $0x70] sm:$0xff]   ;;  %v1007_v33 = vld [vmem:[#allocation8 + $0x78] sm:$0xff]   ;;  %p1119_p0 = pnand %p1118_p13, %p1112_p10 }
  0x40   :  { %909 = vmatprep.subr.bf16.mxu1 %v988_v9  ;;  %v1004_v28 = vld [vmem:[#allocation8 + $0xf0] sm:$0xff]   ;;  %v1008_v34 = vld [vmem:[#allocation8 + $0xf8] sm:$0xff]   ;;  %v1012_v41 = vld [vmem:[#allocation8 + $0x140] sm:$0xff]  }
  0x41   :  { %v1005_v31 = vld [vmem:[#allocation8 + $0x30] sm:$0xff]   ;;  %v1009_v36 = vld [vmem:[#allocation8 + $0x38] sm:$0xff]   ;;  %v1013_v42 = vld [vmem:[#allocation8 + $0x1c0] sm:$0xff]  }
  0x42   :  { %888 = vmatpush3.bf16.msra.mxu0 %v989_v10  ;;  %v1006_v32 = vld [vmem:[#allocation8 + $0xb0] sm:$0xff]   ;;  %v1010_v37 = vld [vmem:[#allocation8 + $0xb8] sm:$0xff]   ;;  %v1014_v48 = vld [vmem:[#allocation8 + $0x100] sm:$0xff]  }
  0x43   :  { %910 = vmatpush3.bf16.msra.mxu1 %v990_v11  ;;  %889 = vmatprep.subr.bf16.mxu0 %v991_v12  ;;  %v60_v38 = vld [vmem:[#allocation5] sm:$0xff]  ;;  %v1016_v50 = vld [vmem:[#allocation8 + $0x148] sm:$0xff]   ;;  %v1015_v52 = vld [vmem:[#allocation8 + $0x180] sm:$0xff]  }
  0x44   :  { %911 = vmatprep.subr.bf16.mxu1 %v992_v13  ;;  %v72_v39 = vrot.slane %v60_v38, %v1208_v35  ;;  %v65_v40 = vcombine.high %v60_v38, %v60_v38  ;;  %v1017_v53 = vld [vmem:[#allocation8 + $0x1c8] sm:$0xff]   ;;  %v1020_v55 = vld [vmem:[#allocation8 + $0x150] sm:$0xff]   ;;  %v1024_v59 = vld [vmem:[#allocation8 + $0x158] sm:$0xff]  }
  0x45   :  { %v1018_v54 = vld [vmem:[#allocation8 + $0x108] sm:$0xff]   ;;  %v1021_v57 = vld [vmem:[#allocation8 + $0x1d0] sm:$0xff]   ;;  %v1025_v61 = vld [vmem:[#allocation8 + $0x1d8] sm:$0xff]  }
  0x46   :  { %890 = vmatpush3.bf16.msra.mxu0 %v993_v14  ;;  %v80_v43 = vcombine.high %v72_v39, %v72_v39  ;;  %v79_v44 = vrot.slane %v65_v40, %v1208_v35  ;;  %v107_v45 = vpack.c.bf16 %v72_v39, %v72_v39  ;;  %v1019_v56 = vld [vmem:[#allocation8 + $0x188] sm:$0xff]   ;;  %v1022_v58 = vld [vmem:[#allocation8 + $0x110] sm:$0xff]   ;;  %v1026_v62 = vld [vmem:[#allocation8 + $0x118] sm:$0xff]  }
  0x47   :  { %912 = vmatpush3.bf16.msra.mxu1 %v994_v15  ;;  %891 = vmatprep.subr.bf16.mxu0 %v995_v16  ;;  %v1023_v60 = vld [vmem:[#allocation8 + $0x190] sm:$0xff]   ;;  %v1028_v63 = vld [vmem:[#allocation8 + $0x160] sm:$0xff]   ;;  %v1027_v0 = vld [vmem:[#allocation8 + $0x198] sm:$0xff]  }
  0x48   :  { %913 = vmatprep.subr.bf16.mxu1 %v996_v17  ;;  %v108_v46 = vpack.c.bf16 %v80_v43, %v80_v43  ;;  %v81_v47 = vcombine.high %v79_v44, %v79_v44  ;;  %v109_v49 = vpack.c.bf16 %v79_v44, %v79_v44  ;;  %v1029_v1 = vld [vmem:[#allocation8 + $0x1e0] sm:$0xff]   ;;  %v1032_v3 = vld [vmem:[#allocation8 + $0x168] sm:$0xff]   ;;  %v1036_v7 = vld [vmem:[#allocation8 + $0x170] sm:$0xff]  }
  0x49   :  { %v1030_v2 = vld [vmem:[#allocation8 + $0x120] sm:$0xff]   ;;  %v1033_v5 = vld [vmem:[#allocation8 + $0x1e8] sm:$0xff]   ;;  %v1037_v9 = vld [vmem:[#allocation8 + $0x1f0] sm:$0xff]  }
  0x4a   :  { %892 = vmatpush3.bf16.msra.mxu0 %v997_v18  ;;  %659 = vmatprep.mubr.bf16.mxu0 %v108_v46  ;;  %v110_v51 = vpack.c.bf16 %v81_v47, %v81_v47  ;;  %v1031_v4 = vld [vmem:[#allocation8 + $0x1a0] sm:$0xff]   ;;  %v1034_v6 = vld [vmem:[#allocation8 + $0x128] sm:$0xff]   ;;  %v1038_v10 = vld [vmem:[#allocation8 + $0x130] sm:$0xff]  }
  0x4b   :  { %914 = vmatpush3.bf16.msra.mxu1 %v998_v19  ;;  %893 = vmatprep.subr.bf16.mxu0 %v999_v20  ;;  %v1035_v8 = vld [vmem:[#allocation8 + $0x1a8] sm:$0xff]   ;;  %v1040_v11 = vld [vmem:[#allocation8 + $0x178] sm:$0xff]   ;;  %v1039_v12 = vld [vmem:[#allocation8 + $0x1b0] sm:$0xff]  }
  0x4c   :  { %915 = vmatprep.subr.bf16.mxu1 %v1000_v21  ;;  %699 = vmatprep.mubr.bf16.mxu1 %v110_v51  ;;  %v1041_v13 = vld [vmem:[#allocation8 + $0x1f8] sm:$0xff]  }
  0x4d   :  { %v61_v14 = vld [vmem:[#allocation5 + $0x8] sm:$0xff] }
  0x4e   :  { %894 = vmatpush3.bf16.msra.mxu0 %v1001_v25  ;;  %v1042_v15 = vld [vmem:[#allocation8 + $0x138] sm:$0xff]   ;;  %v89_v16 = vrot.slane %v61_v14, %v1208_v35  ;;  %v82_v17 = vcombine.high %v61_v14, %v61_v14 }
  0x4f   :  { %916 = vmatpush3.bf16.msra.mxu1 %v1002_v26  ;;  %895 = vmatprep.subr.bf16.mxu0 %v1003_v27  ;;  %v1043_v18 = vld [vmem:[#allocation8 + $0x1b8] sm:$0xff]   ;;  %v1145_v26 = vmov 0.0  }
  0x50   :  { %917 = vmatprep.subr.bf16.mxu1 %v1004_v28  ;;  %v97_v19 = vcombine.high %v89_v16, %v89_v16  ;;  %v96_v20 = vrot.slane %v82_v17, %v1208_v35  ;;  %v111_v21 = vpack.c.bf16 %v89_v16, %v89_v16  ;;  %59 = vst [vmem:[#allocation2] sm:$0x3] %v1145_v26 }
  0x52   :  { %896 = vmatpush3.bf16.msra.mxu0 %v1005_v31  ;;  %v112_v22 = vpack.c.bf16 %v97_v19, %v97_v19  ;;  %v98_v23 = vcombine.high %v96_v20, %v96_v20  ;;  %v113_v24 = vpack.c.bf16 %v96_v20, %v96_v20 }
  0x53   :  { %918 = vmatpush3.bf16.msra.mxu1 %v1006_v32  ;;  %897 = vmatprep.subr.bf16.mxu0 %v1007_v33 }
  0x54   :  { %919 = vmatprep.subr.bf16.mxu1 %v1008_v34  ;;  %v114_v25 = vpack.c.bf16 %v98_v23, %v98_v23 }
  0x56   :  { %898 = vmatpush3.bf16.msra.mxu0 %v1009_v36 }
  0x57   :  { %920 = vmatpush3.bf16.msra.mxu1 %v1010_v37  ;;  %927 = vmatprep.subr.bf16.mxu0 %v1012_v41 }
  0x58   :  { %949 = vmatprep.subr.bf16.mxu1 %v1013_v42 }
  0x59   :  { %660 = vmatmul.mubr.bf16.vlgmr.msra.gmra.mrb[0].mxu0 %v107_v45 }
  0x5a   :  { %928 = vmatpush3.bf16.msra.mxu0 %v1014_v48  ;;  %700 = vmatmul.mubr.bf16.vlgmr.msra.gmra.mrb[0].mxu1 %v109_v49  ;;  %v62_v48 = vld [vmem:[#allocation2] sm:$0x3] }
  0x5b   :  { %929 = vmatprep.subr.bf16.mxu0 %v1016_v50  ;;  %950 = vmatpush3.bf16.msra.mxu1 %v1015_v52  ;;  %v882_v52 = vld [vmem:[#allocation10] ss:$0 sm:$0xff] }
  0x5c   :  { %951 = vmatprep.subr.bf16.mxu1 %v1017_v53  ;;  %739 = vmatprep.mubr.bf16.mxu0 %v112_v22 }
  0x5d   :  { %779 = vmatprep.mubr.bf16.mxu1 %v114_v25 }
  0x5e   :  { %930 = vmatpush3.bf16.msra.mxu0 %v1018_v54 }
  0x5f   :  { %931 = vmatprep.subr.bf16.mxu0 %v1020_v55  ;;  %952 = vmatpush3.bf16.msra.mxu1 %v1019_v56 }
  0x60   :  { %953 = vmatprep.subr.bf16.mxu1 %v1021_v57 }
  0x62   :  { %932 = vmatpush3.bf16.msra.mxu0 %v1022_v58 }
  0x63   :  { %933 = vmatprep.subr.bf16.mxu0 %v1024_v59  ;;  %954 = vmatpush3.bf16.msra.mxu1 %v1023_v60 }
  0x64   :  { %955 = vmatprep.subr.bf16.mxu1 %v1025_v61 }
  0x66   :  { %934 = vmatpush3.bf16.msra.mxu0 %v1026_v62 }
  0x67   :  { %935 = vmatprep.subr.bf16.mxu0 %v1028_v63  ;;  %956 = vmatpush3.bf16.msra.mxu1 %v1027_v0 }
  0x68   :  { %957 = vmatprep.subr.bf16.mxu1 %v1029_v1 }
  0x6a   :  { %936 = vmatpush3.bf16.msra.mxu0 %v1030_v2 }
  0x6b   :  { %937 = vmatprep.subr.bf16.mxu0 %v1032_v3  ;;  %958 = vmatpush3.bf16.msra.mxu1 %v1031_v4 }
  0x6c   :  { %959 = vmatprep.subr.bf16.mxu1 %v1033_v5 }
  0x6e   :  { %938 = vmatpush3.bf16.msra.mxu0 %v1034_v6 }
  0x6f   :  { %939 = vmatprep.subr.bf16.mxu0 %v1036_v7  ;;  %960 = vmatpush3.bf16.msra.mxu1 %v1035_v8 }
  0x70   :  { %961 = vmatprep.subr.bf16.mxu1 %v1037_v9 }
  0x72   :  { %940 = vmatpush3.bf16.msra.mxu0 %v1038_v10 }
  0x73   :  { %941 = vmatprep.subr.bf16.mxu0 %v1040_v11  ;;  %962 = vmatpush3.bf16.msra.mxu1 %v1039_v12 }
  0x74   :  { %963 = vmatprep.subr.bf16.mxu1 %v1041_v13 }
  0x76   :  { %942 = vmatpush3.bf16.msra.mxu0 %v1042_v15 }
  0x77   :  { %964 = vmatpush3.bf16.msra.mxu1 %v1043_v18 }
  0x79   :  { %740 = vmatmul.mubr.bf16.vlgmr.msra.gmra.mrb[4].mxu0 %v111_v21 }
  0x7a   :  { %780 = vmatmul.mubr.bf16.vlgmr.msra.gmra.mrb[4].mxu1 %v113_v24 }
 0x12c   :  { %v899_v27 = vpop.f32.mrb[0].mxu0 }
 0x12d   :  { %v900_v28 = vpop.f32.mrb[1].mxu0  ;;  %v921_v29 = vpop.f32.mrb[0].mxu1 }
 0x12e   :  { %v901_v30 = vadd.f32 %v900_v28, %v899_v27  ;;  %v902_v31 = vpop.f32.mrb[2].mxu0  ;;  %v922_v32 = vpop.f32.mrb[1].mxu1 }
 0x12f   :  { %v903_v33 = vpop.f32.mrb[3].mxu0  ;;  %v923_v34 = vadd.f32 %v922_v32, %v921_v29  ;;  %v924_v35 = vpop.f32.mrb[2].mxu1 }
 0x130   :  { %v925_v36 = vpop.f32.mrb[3].mxu1 }
 0x131   :  { %v702_v37 = vadd.f32 %v923_v34, %v901_v30 }
 0x14c   :  { %v943_v38 = vpop.f32.mrb[4].mxu0 }
 0x14d   :  { %v944_v39 = vpop.f32.mrb[5].mxu0  ;;  %v965_v40 = vpop.f32.mrb[4].mxu1 }
 0x14e   :  { %v945_v41 = vadd.f32 %v944_v39, %v943_v38  ;;  %v946_v42 = vpop.f32.mrb[6].mxu0  ;;  %v966_v43 = vpop.f32.mrb[5].mxu1 }
 0x14f   :  { %v947_v44 = vpop.f32.mrb[7].mxu0  ;;  %v967_v46 = vadd.f32 %v966_v43, %v965_v40  ;;  %v968_v47 = vpop.f32.mrb[6].mxu1 }
 0x150   :  { %v742_v45 = vadd.f32 %v945_v41, %v702_v37  ;;  %v969_v49 = vpop.f32.mrb[7].mxu1 }
 0x152   :  { %v782_v50 = vadd.f32 %v967_v46, %v742_v45 }
 0x154   :  { %v787_v51 = vadd.f32 %v782_v50, %v62_v48 }
 0x156   :  { %788 = vst [vmem:[#allocation2] sm:$0x3] %v787_v51 }
 0x15d   :  { %v792_v53 = vld [vmem:[#allocation2] sm:$0x3] }
 0x15e   :  { %v800_v54 = vadd.f32 %v882_v52, %v792_v53 }
 0x160   :  { %801 = vst [vmem:[#allocation11] sm:$0x3] %v800_v54 }
 0x161   :  { %1122 = shalt.err (!%p1119_p0)
}
 0x162   :  { %s1123_s28 = scalar_lea.hbm %s1230_s4, 32 }
 0x163   :  { %p1124_p1 = scmp.ne.s32.totalorder %s1230_s4, %s1123_s28  ;;  %p1127_p2 = scmp.lt.u32.totalorder %s1123_s28, %s1230_s4 }
 0x165   :  { %p1129_p3 = pnand %p1127_p2, %p1124_p1 }
 0x167   :  { %1132 = shalt.err (!%p1129_p3)
}
 0x168   :  { %811 = dma.vmem_to_hbm [thread:$0]  %s809_s24, 32, %s1230_s4, [#allocation7]  }
 0x169   :  { %1137 = dma.done.wait [#allocation7], 32  }
 0x16a   :  { %1138 = vsyncadd [#allocation7], 4294967264 }
 0x16b   :  { %815 = vsyncpa [#allocation6], 1 }
 0x16c   :  { %816 = vsyncpa [#allocation9], 1 }
 0x16d   :  { %817 = vsyncpa [#allocation7], 1 }

</bundles_post_ra>
